<compile_context>
chip_gen: v7x
topology: tpu7x:2x2x1
jax: 0.10.0
libtpu: 0.0.40
codegen_flags: <defaults>
</compile_context>

<pallas_src>
import functools

import jax
import jax.numpy as jnp
from jax.experimental import pallas as pl
from jax.experimental.pallas import tpu as pltpu


def _hex_to_rgb(h):
    h = h.lstrip('#')
    return [int(h[i:i + 2], 16) for i in (0, 2, 4)]


def hex_list_to_rgb(hex_list):
    # hex entries look like '0xRRGGBB' (module strips the leading '0x' via h[2:])
    return [_hex_to_rgb(h[2:]) for h in hex_list]


def _round_up(a, m):
    return (a + m - 1) // m * m


def _cdiv(a, b):
    return -(-a // b)


def quantizer_kernel(x_ref, w_ref, b_ref, palT_ref, pix_ref, blend_ref):
    # x_ref:    (1, C, TP)  pixel tile, channels on sublanes, pixels on lanes
    # w_ref:    (K, C)      1x1 conv weight
    # b_ref:    (K, 1)      conv bias (broadcast across lanes)
    # palT_ref: (3, K)      palette transposed (rgb rows)
    # pix_ref / blend_ref: (1, 3, TP)  lane-dense output tiles
    x = x_ref[0]                  # (C, TP)
    w = w_ref[...]                # (K, C)
    b = b_ref[...]                # (K, 1)
    pal_t = palT_ref[...]         # (3, K)
    K = w.shape[0]

    # 1x1 conv == (K, C) @ (C, TP) matmul on the MXU (tiny, MXU otherwise idle).
    logits = jnp.dot(w, x, preferred_element_type=jnp.float32) + b        # (K, TP)

    # Softmax over the color axis (sublane axis 0): XLU reductions + EUP exp/recip.
    m = jnp.max(logits, axis=0, keepdims=True)                            # (1, TP)
    e = jnp.exp(logits - m)                                               # (K, TP)
    denom = jnp.sum(e, axis=0, keepdims=True)                             # (1, TP)
    probs = e * pl.reciprocal(denom, approx=True)                         # (K, TP)

    # Blended color = palette^T @ probs  -> lane-dense (3, TP).
    blended = jnp.dot(pal_t, probs, preferred_element_type=jnp.float32)   # (3, TP)

    # Argmax over colors with first-index tie-break (torch.argmax semantics).
    # Done on logits (reusing the already-computed max m); softmax is monotone
    # so this is equivalent and avoids exp/recip rounding perturbing ties.
    iota = jax.lax.broadcasted_iota(jnp.int32, logits.shape, 0)           # (K, TP)
    idx = jnp.min(jnp.where(logits == m, iota, K), axis=0, keepdims=True)  # (1, TP)
    onehot = (iota == idx).astype(jnp.float32)                            # (K, TP)
    discrete = jnp.dot(pal_t, onehot, preferred_element_type=jnp.float32)  # (3, TP)

    # pixel_art = (discrete - blended).detach() + blended : keep the explicit
    # round trip so the forward value is bit-identical to the torch module
    # (dropping it to plain `discrete` is a valid VPU trim on v7x if the bundle
    # dump shows VALU saturating; it changes the value by <= 1 ulp).
    # TODO(synk): training use would need a custom_vjp routing grads through `blended`.
    pix_ref[0] = ((discrete - blended) + blended).astype(pix_ref.dtype)
    blend_ref[0] = blended.astype(blend_ref.dtype)


@functools.partial(jax.jit,
                   static_argnames=("tp_max", "min_grid_steps", "out_dtype"))
def quantizer_forward(x_nchw, conv_w, conv_b, palette_rgb, *,
                      tp_max=8192, min_grid_steps=8, out_dtype=jnp.float32):
    """x_nchw: (B, C, H, W) float32. conv_w: (K, C) (1x1 conv weight squeezed).
    conv_b: (K,). palette_rgb: (K, 3) in [0, 1].
    Returns (pixel_art, blended_color), both (B, 3, H, W).
    out_dtype=jnp.bfloat16 cuts writeback traffic ~30% (useful on v5e) at the
    cost of output precision; default keeps float32 parity with torch."""
    B, C, H, W = x_nchw.shape
    K = conv_w.shape[0]
    HW = H * W

    # NCHW -> (B, C, H*W): pure reshape, no transpose, no pad, no extra HBM pass.
    x_flat = jnp.asarray(x_nchw, jnp.float32).reshape(B, C, HW)

    # Pixel-tile selection (all static Python math):
    #  * multiple of 128 lanes,
    #  * as large as tp_max (8192 preferred over 16K+ to keep per-column vreg
    #    pressure low; per-step VMEM ~(C+6)*tp*4*2 bytes is well under limits),
    #  * but small enough that the grid has >= min_grid_steps steps whenever the
    #    image allows it (v7x megacore load balance, B==1 single-image calls).
    tiles_per_batch = max(1, _cdiv(min_grid_steps, B))
    tp = _round_up(max(_cdiv(HW, tiles_per_batch), 1), 128)
    tp = min(tp, tp_max, _round_up(HW, 128))
    tp = max(tp, 128)
    pt = _cdiv(HW, tp)           # ragged final tile handled by Pallas masking

    w = jnp.asarray(conv_w, jnp.float32)                     # (K, C)
    b = jnp.asarray(conv_b, jnp.float32).reshape(K, 1)       # (K, 1)
    pal_t = jnp.asarray(palette_rgb, jnp.float32).T          # (3, K)

    grid = (B, pt)
    pix_flat, blend_flat = pl.pallas_call(
        quantizer_kernel,
        out_shape=(
            jax.ShapeDtypeStruct((B, 3, HW), out_dtype),
            jax.ShapeDtypeStruct((B, 3, HW), out_dtype),
        ),
        grid_spec=pltpu.PrefetchScalarGridSpec(
            num_scalar_prefetch=0,
            grid=grid,
            in_specs=[
                pl.BlockSpec((1, C, tp), lambda bi, pi: (bi, 0, pi)),  # pixel tile
                pl.BlockSpec((K, C), lambda bi, pi: (0, 0)),           # weight (full)
                pl.BlockSpec((K, 1), lambda bi, pi: (0, 0)),           # bias (full)
                pl.BlockSpec((3, K), lambda bi, pi: (0, 0)),           # palette^T (full)
            ],
            out_specs=[
                pl.BlockSpec((1, 3, tp), lambda bi, pi: (bi, 0, pi)),
                pl.BlockSpec((1, 3, tp), lambda bi, pi: (bi, 0, pi)),
            ],
        ),
        compiler_params=pltpu.CompilerParams(
            dimension_semantics=("parallel", "parallel")),
    )(x_flat, w, b, pal_t)

    # (B, 3, H*W) -> (B, 3, H, W): free reshape, no transpose, no slicing.
    return pix_flat.reshape(B, 3, H, W), blend_flat.reshape(B, 3, H, W)


def _reference_forward(x, conv_w, conv_b, pal):
    logits = jnp.einsum('kc,bchw->bkhw', conv_w, x) + conv_b[None, :, None, None]
    probs = jax.nn.softmax(logits, axis=1)
    blended = jnp.einsum('bkhw,kc->bchw', probs, pal)
    idx = jnp.argmax(probs, axis=1)                       # (B, H, W)
    discrete = jnp.transpose(pal[idx], (0, 3, 1, 2))      # (B, 3, H, W)
    pixel_art = jax.lax.stop_gradient(discrete - blended) + blended
    return pixel_art, blended


if __name__ == "__main__":
    # Deterministic setup (synthetic init, no checkpoint loading).
    color_pallete = ['0x000000', '0xFF0000', '0x00FF00', '0x0000FF',
                     '0xFFFF00', '0x00FFFF', '0xFF00FF', '0xFFFFFF']
    palette_rgb = jnp.asarray(hex_list_to_rgb(color_pallete), jnp.float32) / 255.0
    num_colors = len(color_pallete)

    B, C, H, W = 2, 4, 16, 16

    key = jax.random.PRNGKey(0)
    kx, kw, kb = jax.random.split(key, 3)
    x = jax.random.normal(kx, (B, C, H, W), dtype=jnp.float32)
    # Conv2d(channels -> num_colors, kernel_size=1): weight (K, C, 1, 1) -> (K, C)
    conv_w = 0.1 * jax.random.normal(kw, (num_colors, C), dtype=jnp.float32)
    conv_b = 0.01 * jax.random.normal(kb, (num_colors,), dtype=jnp.float32)

    pixel_art, blended = quantizer_forward(x, conv_w, conv_b, palette_rgb)
    jax.block_until_ready((pixel_art, blended))

    assert pixel_art.shape == (B, 3, H, W)
    assert blended.shape == (B, 3, H, W)

    # Numerical sanity check vs a pure-JAX reference.
    ref_pix, ref_blend = _reference_forward(x, conv_w, conv_b, palette_rgb)
    assert bool(jnp.allclose(blended, ref_blend, rtol=2e-3, atol=2e-3))
    assert bool(jnp.allclose(pixel_art, ref_pix, rtol=2e-3, atol=2e-3))

    print("KERNEL_OK")
</pallas_src>

<mosaic_0001>
module attributes {stable_mosaic.version = 11 : i64} {
  func.func @quantizer_kernel(%arg0: i32, %arg1: i32, %arg2: memref<1x4x128xf32, #tpu.memory_space<vmem>>, %arg3: memref<8x4xf32, #tpu.memory_space<vmem>>, %arg4: memref<8x1xf32, #tpu.memory_space<vmem>>, %arg5: memref<3x8xf32, #tpu.memory_space<vmem>>, %arg6: memref<1x3x128xf32, #tpu.memory_space<vmem>>, %arg7: memref<1x3x128xf32, #tpu.memory_space<vmem>>) attributes {dimension_semantics = [#tpu.dimension_semantics<parallel>, #tpu.dimension_semantics<parallel>], iteration_bounds = array<i64: 2, 2>, scalar_prefetch = 0 : i64, scratch_operands = 0 : i64, tpu.core_type = #tpu.core_type<tc>, window_params = [{transform_indices = @transform_0, window_bounds = array<i64: 1, 4, 128>}, {pipeline_mode = #tpu.pipeline_mode<synchronous>, transform_indices = @transform_1, window_bounds = array<i64: 8, 4>}, {pipeline_mode = #tpu.pipeline_mode<synchronous>, transform_indices = @transform_2, window_bounds = array<i64: 8, 1>}, {pipeline_mode = #tpu.pipeline_mode<synchronous>, transform_indices = @transform_3, window_bounds = array<i64: 3, 8>}, {transform_indices = @transform_4, window_bounds = array<i64: 1, 3, 128>}, {transform_indices = @transform_5, window_bounds = array<i64: 1, 3, 128>}]} {
    %c0 = arith.constant 0 : index
    %c0_0 = arith.constant 0 : index
    %c0_1 = arith.constant 0 : index
    %0 = vector.load %arg2[%c0, %c0_0, %c0_1] : memref<1x4x128xf32, #tpu.memory_space<vmem>>, vector<1x4x128xf32>
    %1 = vector.shape_cast %0 : vector<1x4x128xf32> to vector<4x128xf32>
    %c0_2 = arith.constant 0 : index
    %c0_3 = arith.constant 0 : index
    %2 = vector.load %arg3[%c0_2, %c0_3] : memref<8x4xf32, #tpu.memory_space<vmem>>, vector<8x4xf32>
    %c0_4 = arith.constant 0 : index
    %c0_5 = arith.constant 0 : index
    %3 = vector.load %arg4[%c0_4, %c0_5] : memref<8x1xf32, #tpu.memory_space<vmem>>, vector<8x1xf32>
    %c0_6 = arith.constant 0 : index
    %c0_7 = arith.constant 0 : index
    %4 = vector.load %arg5[%c0_6, %c0_7] : memref<3x8xf32, #tpu.memory_space<vmem>>, vector<3x8xf32>
    %cst = arith.constant dense<0.000000e+00> : vector<8x128xf32>
    %5 = tpu.matmul %2, %1, %cst {dimension_numbers = #tpu.dot_dimension_numbers<[1], [0], [0], [1], [0, 0, 1, 1], [], []>} : vector<8x4xf32>, vector<4x128xf32>, vector<8x128xf32> -> vector<8x128xf32>
    %6 = vector.broadcast %3 : vector<8x1xf32> to vector<8x128xf32>
    %7 = arith.addf %5, %6 : vector<8x128xf32>
    %cst_8 = arith.constant dense<0xFF800000> : vector<128xf32>
    %8 = vector.multi_reduction <maximumf>, %7, %cst_8 [0] : vector<8x128xf32> to vector<128xf32>
    %9 = vector.shape_cast %8 : vector<128xf32> to vector<1x128xf32>
    %10 = vector.broadcast %9 : vector<1x128xf32> to vector<8x128xf32>
    %11 = arith.subf %7, %10 : vector<8x128xf32>
    %12 = math.exp %11 : vector<8x128xf32>
    %cst_9 = arith.constant dense<0.000000e+00> : vector<128xf32>
    %13 = vector.multi_reduction <add>, %12, %cst_9 [0] : vector<8x128xf32> to vector<128xf32>
    %14 = vector.shape_cast %13 : vector<128xf32> to vector<1x128xf32>
    %15 = tpu.reciprocal %14 {approx = true} : vector<1x128xf32> -> vector<1x128xf32>
    %16 = vector.broadcast %15 : vector<1x128xf32> to vector<8x128xf32>
    %17 = arith.mulf %12, %16 : vector<8x128xf32>
    %cst_10 = arith.constant dense<0.000000e+00> : vector<3x128xf32>
    %18 = tpu.matmul %4, %17, %cst_10 {dimension_numbers = #tpu.dot_dimension_numbers<[1], [0], [0], [1], [0, 0, 1, 1], [], []>} : vector<3x8xf32>, vector<8x128xf32>, vector<3x128xf32> -> vector<3x128xf32>
    %19 = tpu.iota {dimensions = array<i32: 0>} : vector<8x128xi32>
    %20 = vector.broadcast %9 : vector<1x128xf32> to vector<8x128xf32>
    %21 = arith.cmpf oeq, %7, %20 : vector<8x128xf32>
    %c8_i32 = arith.constant 8 : i32
    %22 = vector.broadcast %c8_i32 : i32 to vector<8x128xi32>
    %23 = arith.select %21, %19, %22 : vector<8x128xi1>, vector<8x128xi32>
    %cst_11 = arith.constant dense<2147483647> : vector<128xi32>
    %24 = vector.multi_reduction <minsi>, %23, %cst_11 [0] : vector<8x128xi32> to vector<128xi32>
    %25 = vector.shape_cast %24 : vector<128xi32> to vector<1x128xi32>
    %26 = vector.broadcast %25 : vector<1x128xi32> to vector<8x128xi32>
    %27 = arith.cmpi eq, %19, %26 : vector<8x128xi32>
    %28 = arith.extui %27 : vector<8x128xi1> to vector<8x128xi32>
    %29 = arith.sitofp %28 : vector<8x128xi32> to vector<8x128xf32>
    %cst_12 = arith.constant dense<0.000000e+00> : vector<3x128xf32>
    %30 = tpu.matmul %4, %29, %cst_12 {dimension_numbers = #tpu.dot_dimension_numbers<[1], [0], [0], [1], [0, 0, 1, 1], [], []>} : vector<3x8xf32>, vector<8x128xf32>, vector<3x128xf32> -> vector<3x128xf32>
    %31 = arith.subf %30, %18 : vector<3x128xf32>
    %32 = arith.addf %31, %18 : vector<3x128xf32>
    %c0_13 = arith.constant 0 : index
    %c0_14 = arith.constant 0 : index
    %c0_15 = arith.constant 0 : index
    %33 = vector.load %arg6[%c0_13, %c0_14, %c0_15] : memref<1x3x128xf32, #tpu.memory_space<vmem>>, vector<1x3x128xf32>
    %34 = vector.shape_cast %33 : vector<1x3x128xf32> to vector<3x128xf32>
    %35 = vector.shape_cast %32 : vector<3x128xf32> to vector<1x3x128xf32>
    tpu.vector_store %arg6[%c0_13, %c0_14, %c0_15], %35 {strides = array<i32>} : memref<1x3x128xf32, #tpu.memory_space<vmem>>, vector<1x3x128xf32>,
    %c0_16 = arith.constant 0 : index
    %c0_17 = arith.constant 0 : index
    %c0_18 = arith.constant 0 : index
    %36 = vector.load %arg7[%c0_16, %c0_17, %c0_18] : memref<1x3x128xf32, #tpu.memory_space<vmem>>, vector<1x3x128xf32>
    %37 = vector.shape_cast %36 : vector<1x3x128xf32> to vector<3x128xf32>
    %38 = vector.shape_cast %18 : vector<3x128xf32> to vector<1x3x128xf32>
    tpu.vector_store %arg7[%c0_16, %c0_17, %c0_18], %38 {strides = array<i32>} : memref<1x3x128xf32, #tpu.memory_space<vmem>>, vector<1x3x128xf32>,
    return
  }
  func.func @transform_0(%arg0: i32, %arg1: i32) -> (i32, i32, i32) {
    %c0_i32 = arith.constant 0 : i32
    %c0_i32_0 = arith.constant 0 : i32
    return %arg0, %c0_i32, %arg1 : i32, i32, i32
  }
  func.func @transform_1(%arg0: i32, %arg1: i32) -> (i32, i32) {
    %c0_i32 = arith.constant 0 : i32
    %c0_i32_0 = arith.constant 0 : i32
    %c0_i32_1 = arith.constant 0 : i32
    return %c0_i32, %c0_i32_0 : i32, i32
  }
  func.func @transform_2(%arg0: i32, %arg1: i32) -> (i32, i32) {
    %c0_i32 = arith.constant 0 : i32
    %c0_i32_0 = arith.constant 0 : i32
    %c0_i32_1 = arith.constant 0 : i32
    return %c0_i32, %c0_i32_0 : i32, i32
  }
  func.func @transform_3(%arg0: i32, %arg1: i32) -> (i32, i32) {
    %c0_i32 = arith.constant 0 : i32
    %c0_i32_0 = arith.constant 0 : i32
    %c0_i32_1 = arith.constant 0 : i32
    return %c0_i32, %c0_i32_0 : i32, i32
  }
  func.func @transform_4(%arg0: i32, %arg1: i32) -> (i32, i32, i32) {
    %c0_i32 = arith.constant 0 : i32
    %c0_i32_0 = arith.constant 0 : i32
    return %arg0, %c0_i32, %arg1 : i32, i32, i32
  }
  func.func @transform_5(%arg0: i32, %arg1: i32) -> (i32, i32, i32) {
    %c0_i32 = arith.constant 0 : i32
    %c0_i32_0 = arith.constant 0 : i32
    return %arg0, %c0_i32, %arg1 : i32, i32, i32
  }
}

</mosaic_0001>

<bundles_post_ra>
// kernel: quantizer_forward.1
= control target key start
LH: loop header
LB: loop body
LE: loop exit
PB: predicated region body
PF: predicated region fallthrough
CT: control target
= control target key end

     0   :  { %s841_s18 = smov 0   ;;  %s843_s19 = smov 0   ;;  %s914_s0 = inlined_call_operand.vmem [shape: f32[2,4,256], index: 0, kind: input, shape index: {}]   ;;  %s915_s1 = inlined_call_operand.vmem [shape: f32[8,4], index: 1, kind: input, shape index: {}]   ;;  %s916_s2 = inlined_call_operand.vmem [shape: f32[8,1], index: 2, kind: input, shape index: {}]   ;;  %s917_s3 = inlined_call_operand.vmem [shape: f32[3,8], index: 3, kind: input, shape index: {}]   ;;  %s918_s4 = inlined_call_operand.vmem [shape: f32[2,3,256], index: 4, kind: output, shape index: {0}]   ;;  %s919_s5 = inlined_call_operand.vmem [shape: f32[2,3,256], index: 5, kind: output, shape index: {1}]  }
   0x1   :  { %s845_s20 = smov 0   ;;  %s847_s21 = smov 0  }
   0x2   :  { %s849_s22 = smov 0  }
   0x3 LB: > { %s25_s23 = sadd.s32 1, %s797_s20  ;;  %s28_s24 = sadd.s32 1, %s801_s21  ;;  %s805_s22 = sphi %s849_s22, %s16_s22   ;;  %s801_s21 = sphi %s847_s21, %s923_s21   ;;  %s797_s20 = sphi %s845_s20, %s922_s20   ;;  %s793_s19 = sphi %s843_s19, %s921_s19   ;;  %s789_s18 = sphi %s841_s18, %s920_s18  }
   0x4   : > { %p26_p0 = scmp.ge.s32.totalorder %s25_s23, 2  ;;  %p682_p1 = scmp.ge.s32.totalorder %s805_s22, 1 }
   0x5   : > { %p211_p2 = scmp.lt.s32.totalorder %s805_s22, 5 }
   0x6   : > { %s925_s23 = smov (%p26_p0, %s25_s23), 0  ;;  %s927_s24 = smov (!%p26_p0, %s28_s24), %s801_s21 }
   0x7   : > { %p212_p3 = pnand %p682_p1, %p211_p2  ;;  %p30_p4 = scmp.ge.s32.totalorder %s927_s24, 2 }
   0x8   : > { %p253_p5 = scmp.lt.s32.totalorder (!%p212_p3), %s793_s19, 1  ;;  %p255_p6 = scmp.lt.s32.totalorder (!%p212_p3), %s789_s18, 1  ;;  %v807_v0 = vmov (!%p212_p3), 0.0   ;;  %vm808_vm0 = vmmov (!%p212_p3), 0   ;;  %v279_v1 = vld [vmem:[%s916_s2] sm:$0xff] (!%p212_p3)  ;;  %v809_v2 = vmov (!%p212_p3), 0   ;;  %v455_v12 = vlaneseq (!%p212_p3) }
   0x9   : > { %s929_s24 = smov (%p30_p4, %s927_s24), 0  ;;  %215 = sbr.rel (%p212_p3) target bundleno = 507 (0x1fb), region = 36 }
   0xa   : > { %703 = vmatprep.subr.mxu0 (!%p212_p3), %v807_v0  ;;  %705 = vmatprep.mubr.msk.f32.mxu0 (!%p212_p3), %vm808_vm0, %v807_v0  ;;  %vm290_vm1 = vcmask (!%p212_p3), 1043456   ;;  %v278_v3 = vld [vmem:[%s915_s1] sm:$0xff] (!%p212_p3)  ;;  %vm286_vm2 = vcmask (!%p212_p3), 31744   ;;  %v456_v15 = vshrl.u32 (!%p212_p3), %v455_v12, 7  ;;  %vm381_vm7 = vcmask (!%p212_p3), 64512  }
   0xb   : > { %762 = vset.pattern.permute.xlu0 (!%p212_p3), %v809_v2  ;;  %708 = vmatprep.subr.mxu1 (!%p212_p3), %v807_v0  ;;  %v280_v26 = vld [vmem:[%s917_s3] sm:$0x7] (!%p212_p3)  ;;  %v810_v28 = vmov (!%p212_p3), 1.0  }
   0xc   : > { %283 = vperm.xlu0 (!%p212_p3), %762, %v279_v1   ;;  %710 = vmatprep.mubr.msk.f32.mxu1 (!%p212_p3), %vm808_vm0, %v807_v0 }
  0x10   : > { %s931_s19 = smov (!%p253_p5, %s793_s19), 1  ;;  %s933_s18 = smov (!%p255_p6, %s789_s18), 1 }
  0x11   : > { %s683_s27 = sshll.u32 %s931_s19, 1 }
  0x12   : > { %s258_s28 = sadd.s32 %s683_s27, %s933_s18 }
  0x13   : > { %s876_s29 = sshll.u32 %s258_s28, 2 }
  0x14   : > { %s260_s7 = scalar_lea.vmem %s914_s0, %s876_s29  ;;  %s276_s14 = scalar_lea.vmem %s919_s5, %s876_s29 }
  0x15   : > { %v277_v4 = vld [vmem:[%s260_s7] sm:$0xf]  ;;  %s268_s17 = scalar_lea.vmem %s918_s4, %s876_s29 }
  0x16   : > { %704 = vmatpush3.msk.msra.mxu0 %vm290_vm1, %v277_v4 }
  0x17   : > { %706 = vmatmul.mubr.msk.f32.vlgmr.msra.gmra.mrb[0].mxu0 %vm286_vm2, %v278_v3  ;;  %713 = vmatprep.subr.mxu0 %v807_v0 }
  0x18   : > { %715 = vmatprep.mubr.msk.f32.mxu0 %vm808_vm0, %v807_v0 }
  0x8b   : > { %v284_v5 = vpop.permute.xlu0 %283 }
  0xea   : > { %v360_v6 = vpop.f32.mrb[0].mxu0 }
  0xeb   : > { %v361_v7 = vadd.f32 %v360_v6, %v284_v5  ;;  %v707_v8 = vpop.f32.mrb[1].mxu0 }
  0xed   : > { %v364_v9 = vrot.slane %v361_v7, 4 }
  0xef   : > { %v365_v10 = vmax.f32 %v361_v7, %v364_v9 }
  0xf1   : > { %v366_v11 = vrot.slane %v365_v10, 2 }
  0xf3   : > { %v367_v13 = vmax.f32 %v365_v10, %v366_v11 }
  0xf5   : > { %v368_v14 = vrot.slane %v367_v13, 1 }
  0xf7   : > { %v369_v16 = vmax.f32 %v367_v13, %v368_v14 }
  0xf9   : > { %v370_v17 = vsub.f32 %v361_v7, %v369_v16  ;;  %vm457_vm3 = vcmp.eq.f32.partialorder %v361_v7, %v369_v16 }
  0xfa   : > { %v458_v18 = vsel %vm457_vm3, %v456_v15, 8 }
  0xfb   : > { %v371_v19 = vmul.f32 1.442695, %v370_v17  ;;  %v459_v20 = vrot.slane %v458_v18, 4 }
  0xfd   : > { %763 = vpow2.f32 %v371_v19  ;;  %vm460_vm4 = vcmp.lt.s32.totalorder %v458_v18, %v459_v20 }
  0xfe   : > { %v461_v21 = vsel %vm460_vm4, %v458_v18, %v459_v20 }
  0xff   : > { %v462_v22 = vrot.slane %v461_v21, 2 }
 0x101   : > { %vm463_vm5 = vcmp.lt.s32.totalorder %v461_v21, %v462_v22 }
 0x102   : > { %v464_v23 = vsel %vm463_vm5, %v461_v21, %v462_v22 }
 0x103   : > { %v465_v24 = vrot.slane %v464_v23, 1 }
 0x105   : > { %vm466_vm6 = vcmp.lt.s32.totalorder %v464_v23, %v465_v24 }
 0x106   : > { %v467_v25 = vsel %vm466_vm6, %v464_v23, %v465_v24 }
 0x107   : > { %v764_v27 = vpop.eup %763  ;;  %vm468_vm8 = vcmp.eq.s32.totalorder %v456_v15, %v467_v25 }
 0x108   : > { %714 = vmatpush3.msk.msra.mxu0 %vm468_vm8, %v810_v28  ;;  %v373_v29 = vrot.slane %v764_v27, 4 }
 0x109   : > { %716 = vmatmul.mubr.msk.f32.vlgmr.msra.gmra.mrb[2].mxu0 %vm381_vm7, %v280_v26 }
 0x10a   : > { %v374_v30 = vadd.f32 %v764_v27, %v373_v29 }
 0x10c   : > { %v375_v31 = vrot.slane %v374_v30, 2 }
 0x10e   : > { %v376_v32 = vadd.f32 %v375_v31, %v374_v30 }
 0x110   : > { %v377_v33 = vrot.slane %v376_v32, 1 }
 0x112   : > { %v378_v34 = vadd.f32 %v377_v33, %v376_v32 }
 0x114   : > { %765 = vrcp.f32 %v378_v34 }
 0x11e   : > { %v766_v35 = vpop.eup %765 }
 0x11f   : > { %v380_v36 = vmul.f32 %v766_v35, %v764_v27 }
 0x121   : > { %709 = vmatpush3.msra.mxu1 %v380_v36 }
 0x122   : > { %711 = vmatmul.mubr.msk.f32.vlgmr.msra.gmra.mrb[0].mxu1 %vm381_vm7, %v280_v26 }
 0x1dc   : > { %v537_v37 = vpop.f32.mrb[2].mxu0 }
 0x1dd   : > { %v717_v38 = vpop.f32.mrb[3].mxu0 }
 0x1f5   : > { %v451_v39 = vpop.f32.mrb[0].mxu1 }
 0x1f6   : > { %v541_v40 = vsub.f32 %v537_v37, %v451_v39  ;;  %544 = vst [vmem:[%s276_s14] sm:$0x7] %v451_v39  ;;  %v712_v41 = vpop.f32.mrb[1].mxu1 }
 0x1f8   : > { %v542_v42 = vadd.f32 %v541_v40, %v451_v39 }
 0x1fa   : > { %543 = vst [vmem:[%s268_s17] sm:$0x7] %v542_v42 }
 0x1fb PF: > { %s16_s22 = sadd.s32 1, %s805_s22   ;;  %s920_s18 = smov %s797_s20 }
 0x1fc   : > { %p13_p7 = scmp.ge.s32.totalorder %s16_s22, 6   ;;  %s921_s19 = smov %s801_s21 }
 0x1fd   : > { %s922_s20 = smov %s925_s23  ;;  %s923_s21 = smov %s929_s24 }
 0x1fe   :  { %15 = sbr.rel (!%p13_p7) target bundleno = 3 (0x3), region = 78 }

</bundles_post_ra>
